<compile_context>
chip_gen: v5e
topology: v5e:2x2
jax: 0.10.0
libtpu: 0.0.40
codegen_flags: <defaults>
</compile_context>

<pallas_src>
import functools

import jax
import jax.numpy as jnp
from jax.experimental import pallas as pl
from jax.experimental.pallas import tpu as pltpu

MARGIN = 0.2
GAMMA = 5.0
_SCORE_PAD = -1e30      # pad value: exp(gamma * pad - m) underflows to exactly 0


def contrastive_loss_kernel(score_ref, label_ref, sim_ref, lse_ref,
                            sim_sc, m_sc, l_sc, *, gamma):
    """Grid = (num_m_tiles [parallel], num_n_tiles [arbitrary, reduction])."""
    n_idx = pl.program_id(1)

    @pl.when(n_idx == 0)
    def _():
        sim_sc[...] = jnp.zeros_like(sim_sc)
        m_sc[...] = jnp.full(m_sc.shape, -jnp.inf, dtype=jnp.float32)
        l_sc[...] = jnp.zeros_like(l_sc)

    s = score_ref[...].astype(jnp.float32) * gamma          # (tn, tm) f32
    pos = label_ref[...] != 0                                # binary mask, dtype-agnostic

    # Single select: positives kept in pos_s, zeroed in neg (bit-exact with torch masking).
    pos_s = jnp.where(pos, s, 0.0)
    neg = s - pos_s

    tn = s.shape[0]
    ones = jnp.ones((8, tn), jnp.float32)                    # splat constant (free)

    # Per-column partial sim: axis-0 sum offloaded to the idle MXU (row-replicated result).
    sim_sc[...] += jnp.dot(ones, pos_s, preferred_element_type=jnp.float32)

    # Online (streaming) logsumexp over dim 0: max on VPU/XLU, sum-of-exp on the MXU.
    m_new = jnp.maximum(m_sc[...], jnp.max(neg, axis=0, keepdims=True))   # (1, tm)
    p = jnp.exp(neg - m_new)                                              # (tn, tm)
    l_sc[...] = (l_sc[...] * jnp.exp(m_sc[...] - m_new)
                 + jnp.dot(ones, p, preferred_element_type=jnp.float32))
    m_sc[...] = m_new

    @pl.when(n_idx == pl.num_programs(1) - 1)
    def _():
        sim_ref[...] = sim_sc[...][0:1]                      # rows are replicated
        lse_ref[...] = m_sc[...] + jnp.log(l_sc[...][0:1])


def _sublane_align(dtype):
    # f32 -> 8 sublanes, bf16 -> 16, int8/bool -> 32 (sub-32-bit dtypes pack along sublanes).
    itemsize = jnp.dtype(dtype).itemsize
    return 8 * max(1, 4 // itemsize)


def _choose_tile(dim, pref, align):
    """Largest multiple of `align` dividing `dim`, capped at `pref` (requires dim % align == 0)."""
    assert dim % align == 0
    t = min(max(pref, align), dim)
    t -= t % align
    while t > align:
        if dim % t == 0:
            return t
        t -= align
    return align


def _vmem_limit_bytes():
    """Per-generation scoped-VMEM cap: 32 MiB on v7x (64 MiB physical), 64 MiB on v5e/v6e."""
    try:
        cap = int(pltpu.get_tpu_info().vmem_capacity_bytes)
    except Exception:
        cap = 0
    if cap <= 0:
        return 32 * 1024 * 1024          # conservative default: fits every generation
    return min(cap // 2, 64 * 1024 * 1024)


def contrastive_loss(score, label, *, margin=MARGIN, gamma=GAMMA,
                     tile_m=2048, tile_n=256):
    """score: (N, M); label: (N, M), nonzero == positive.

    For best HBM throughput pass score as bfloat16 and label as int8, produced upstream in
    those dtypes (do NOT cast here -- a wrapper cast would add an extra HBM pass)."""
    N, M = score.shape
    assert label.shape == (N, M)

    align_n = max(_sublane_align(score.dtype), _sublane_align(label.dtype))
    n_pad = (-N) % align_n
    m_pad = (-M) % 128
    if n_pad or m_pad:
        # Padded rows: label=0 and a very negative score -> exp(pad - m) underflows to 0,
        # so they contribute nothing; padded columns are dropped after the kernel.
        score = jnp.pad(score, ((0, n_pad), (0, m_pad)), constant_values=_SCORE_PAD)
        label = jnp.pad(label, ((0, n_pad), (0, m_pad)), constant_values=0)
    Np, Mp = N + n_pad, M + m_pad

    # Keep >= 2 tiles along the parallel M axis so both v7x TensorCores get work.
    tm_pref = min(tile_m, max(128, (Mp // 2) // 128 * 128))
    tm = _choose_tile(Mp, tm_pref, 128)
    tn = _choose_tile(Np, tile_n, align_n)
    grid = (Mp // tm, Np // tn)

    kernel = functools.partial(contrastive_loss_kernel, gamma=float(gamma))

    sim_cols, lse_cols = pl.pallas_call(
        kernel,
        out_shape=(
            jax.ShapeDtypeStruct((1, Mp), jnp.float32),   # per-column sim partials
            jax.ShapeDtypeStruct((1, Mp), jnp.float32),   # per-column logsumexp over N
        ),
        grid_spec=pltpu.PrefetchScalarGridSpec(
            num_scalar_prefetch=0,
            grid=grid,
            in_specs=[
                pl.BlockSpec((tn, tm), lambda i, j: (j, i)),
                pl.BlockSpec((tn, tm), lambda i, j: (j, i)),
            ],
            out_specs=[
                pl.BlockSpec((1, tm), lambda i, j: (0, i)),
                pl.BlockSpec((1, tm), lambda i, j: (0, i)),
            ],
            scratch_shapes=[
                pltpu.VMEM((8, tm), jnp.float32),   # sim accumulator (row-replicated)
                pltpu.VMEM((1, tm), jnp.float32),   # running max
                pltpu.VMEM((8, tm), jnp.float32),   # running sum of exp (row-replicated)
            ],
        ),
        compiler_params=pltpu.CompilerParams(
            dimension_semantics=("parallel", "arbitrary"),
            vmem_limit_bytes=_vmem_limit_bytes(),
        ),
    )(score, label)

    # Drop padded columns, then the trivial O(M) final combine (global scalar sim is
    # needed by every column, so it cannot be fused into the per-column pass).
    sim_cols = sim_cols[:, :M]
    lse_cols = lse_cols[:, :M]
    sim = jnp.sum(sim_cols)
    return jnp.sum(jnp.maximum(lse_cols - sim + margin, 0.0))


def contrastive_loss_ref(score, label, margin=MARGIN, gamma=GAMMA):
    # Pure-JAX reference mirroring the PyTorch forward.
    s = score.astype(jnp.float32) * gamma
    lab = label.astype(jnp.float32)
    sim = jnp.sum(s * lab)
    neg = s * (lab == 0).astype(jnp.float32)
    lse = jax.scipy.special.logsumexp(neg, axis=0)
    return jnp.sum(jnp.maximum(lse - sim + margin, 0.0))


if __name__ == "__main__":
    key = jax.random.PRNGKey(0)
    k1, k2, k3, k4, k5, k6 = jax.random.split(key, 6)

    # Case 1: narrow-dtype streaming path (bf16 score, int8 label), tiled grid (4, 2).
    N1, M1 = 64, 512
    score1 = jax.random.normal(k1, (N1, M1), dtype=jnp.bfloat16)
    label1 = jax.random.bernoulli(k2, p=0.1, shape=(N1, M1)).astype(jnp.int8)
    out1 = jax.block_until_ready(contrastive_loss(score1, label1, tile_m=128, tile_n=32))
    ref1 = jax.block_until_ready(contrastive_loss_ref(score1, label1))
    assert jnp.allclose(out1, ref1, rtol=2e-3, atol=5e-2), (out1, ref1)

    # Case 2: original toy shape, float32 score/label, single-block grid (1, 1).
    N2, M2 = 8, 128
    score2 = jax.random.normal(k3, (N2, M2), dtype=jnp.float32)
    label2 = jax.random.bernoulli(k4, p=0.1, shape=(N2, M2)).astype(jnp.float32)
    out2 = jax.block_until_ready(contrastive_loss(score2, label2))
    ref2 = jax.block_until_ready(contrastive_loss_ref(score2, label2))
    assert jnp.allclose(out2, ref2, rtol=1e-4, atol=1e-3), (out2, ref2)

    # Case 3: unaligned shapes -> wrapper padding path (N padded to 32, M padded to 256).
    N3, M3 = 13, 200
    score3 = jax.random.normal(k5, (N3, M3), dtype=jnp.float32)
    label3 = jax.random.bernoulli(k6, p=0.1, shape=(N3, M3)).astype(jnp.int8)
    out3 = jax.block_until_ready(contrastive_loss(score3, label3))
    ref3 = jax.block_until_ready(contrastive_loss_ref(score3, label3))
    assert jnp.allclose(out3, ref3, rtol=1e-4, atol=1e-3), (out3, ref3)

    print("KERNEL_OK")
</pallas_src>

<mosaic_0001>
module attributes {stable_mosaic.version = 11 : i64} {
  func.func @contrastive_loss_kernel(%arg0: i32, %arg1: i32, %arg2: memref<32x128xbf16, #tpu.memory_space<vmem>>, %arg3: memref<32x128xi8, #tpu.memory_space<vmem>>, %arg4: memref<1x128xf32, #tpu.memory_space<vmem>>, %arg5: memref<1x128xf32, #tpu.memory_space<vmem>>, %arg6: memref<8x128xf32, #tpu.memory_space<vmem>>, %arg7: memref<1x128xf32, #tpu.memory_space<vmem>>, %arg8: memref<8x128xf32, #tpu.memory_space<vmem>>) attributes {dimension_semantics = [#tpu.dimension_semantics<parallel>, #tpu.dimension_semantics<arbitrary>], iteration_bounds = array<i64: 4, 2>, scalar_prefetch = 0 : i64, scratch_operands = 3 : i64, tpu.core_type = #tpu.core_type<tc>, window_params = [{transform_indices = @transform_0, window_bounds = array<i64: 32, 128>}, {transform_indices = @transform_1, window_bounds = array<i64: 32, 128>}, {transform_indices = @transform_2, window_bounds = array<i64: 1, 128>}, {transform_indices = @transform_3, window_bounds = array<i64: 1, 128>}]} {
    %c0_i32 = arith.constant 0 : i32
    %0 = arith.cmpi eq, %arg1, %c0_i32 : i32
    %1 = arith.extui %0 : i1 to i32
    %c0_i32_0 = arith.constant 0 : i32
    %2 = arith.cmpi ne, %1, %c0_i32_0 : i32
    scf.if %2 {
      %cst_24 = arith.constant 0.000000e+00 : f32
      %38 = vector.broadcast %cst_24 : f32 to vector<8x128xf32>
      %c0_25 = arith.constant 0 : index
      %c0_26 = arith.constant 0 : index
      %39 = vector.load %arg6[%c0_25, %c0_26] : memref<8x128xf32, #tpu.memory_space<vmem>>, vector<8x128xf32>
      tpu.vector_store %arg6[%c0_25, %c0_26], %38 {strides = array<i32>} : memref<8x128xf32, #tpu.memory_space<vmem>>, vector<8x128xf32>,
      %cst_27 = arith.constant 0xFF800000 : f32
      %40 = vector.broadcast %cst_27 : f32 to vector<1x128xf32>
      %c0_28 = arith.constant 0 : index
      %c0_29 = arith.constant 0 : index
      %41 = vector.load %arg7[%c0_28, %c0_29] : memref<1x128xf32, #tpu.memory_space<vmem>>, vector<1x128xf32>
      tpu.vector_store %arg7[%c0_28, %c0_29], %40 {strides = array<i32>} : memref<1x128xf32, #tpu.memory_space<vmem>>, vector<1x128xf32>,
      %cst_30 = arith.constant 0.000000e+00 : f32
      %42 = vector.broadcast %cst_30 : f32 to vector<8x128xf32>
      %c0_31 = arith.constant 0 : index
      %c0_32 = arith.constant 0 : index
      %43 = vector.load %arg8[%c0_31, %c0_32] : memref<8x128xf32, #tpu.memory_space<vmem>>, vector<8x128xf32>
      tpu.vector_store %arg8[%c0_31, %c0_32], %42 {strides = array<i32>} : memref<8x128xf32, #tpu.memory_space<vmem>>, vector<8x128xf32>,
    } else {
    }
    %c0 = arith.constant 0 : index
    %c0_1 = arith.constant 0 : index
    %3 = vector.load %arg2[%c0, %c0_1] : memref<32x128xbf16, #tpu.memory_space<vmem>>, vector<32x128xbf16>
    %4 = arith.extf %3 : vector<32x128xbf16> to vector<32x128xf32>
    %cst = arith.constant 5.000000e+00 : f32
    %5 = vector.broadcast %cst : f32 to vector<32x128xf32>
    %6 = arith.mulf %4, %5 : vector<32x128xf32>
    %c0_2 = arith.constant 0 : index
    %c0_3 = arith.constant 0 : index
    %7 = vector.load %arg3[%c0_2, %c0_3] : memref<32x128xi8, #tpu.memory_space<vmem>>, vector<32x128xi8>
    %c0_i8 = arith.constant 0 : i8
    %8 = vector.broadcast %c0_i8 : i8 to vector<32x128xi8>
    %9 = arith.cmpi ne, %7, %8 : vector<32x128xi8>
    %cst_4 = arith.constant 0.000000e+00 : f32
    %10 = vector.broadcast %cst_4 : f32 to vector<32x128xf32>
    %11 = arith.select %9, %6, %10 : vector<32x128xi1>, vector<32x128xf32>
    %12 = arith.subf %6, %11 : vector<32x128xf32>
    %cst_5 = arith.constant 1.000000e+00 : f32
    %13 = vector.broadcast %cst_5 : f32 to vector<8x32xf32>
    %c0_6 = arith.constant 0 : index
    %c0_7 = arith.constant 0 : index
    %14 = vector.load %arg6[%c0_6, %c0_7] : memref<8x128xf32, #tpu.memory_space<vmem>>, vector<8x128xf32>
    %cst_8 = arith.constant dense<0.000000e+00> : vector<8x128xf32>
    %15 = tpu.matmul %13, %11, %cst_8 {dimension_numbers = #tpu.dot_dimension_numbers<[1], [0], [0], [1], [0, 0, 1, 1], [], []>} : vector<8x32xf32>, vector<32x128xf32>, vector<8x128xf32> -> vector<8x128xf32>
    %16 = arith.addf %14, %15 : vector<8x128xf32>
    %c0_9 = arith.constant 0 : index
    %c0_10 = arith.constant 0 : index
    %17 = vector.load %arg6[%c0_9, %c0_10] : memref<8x128xf32, #tpu.memory_space<vmem>>, vector<8x128xf32>
    tpu.vector_store %arg6[%c0_9, %c0_10], %16 {strides = array<i32>} : memref<8x128xf32, #tpu.memory_space<vmem>>, vector<8x128xf32>,
    %c0_11 = arith.constant 0 : index
    %c0_12 = arith.constant 0 : index
    %18 = vector.load %arg7[%c0_11, %c0_12] : memref<1x128xf32, #tpu.memory_space<vmem>>, vector<1x128xf32>
    %cst_13 = arith.constant dense<0xFF800000> : vector<128xf32>
    %19 = vector.multi_reduction <maximumf>, %12, %cst_13 [0] : vector<32x128xf32> to vector<128xf32>
    %20 = vector.shape_cast %19 : vector<128xf32> to vector<1x128xf32>
    %21 = arith.maximumf %18, %20 : vector<1x128xf32>
    %22 = vector.broadcast %21 : vector<1x128xf32> to vector<32x128xf32>
    %23 = arith.subf %12, %22 : vector<32x128xf32>
    %24 = math.exp %23 : vector<32x128xf32>
    %c0_14 = arith.constant 0 : index
    %c0_15 = arith.constant 0 : index
    %25 = vector.load %arg8[%c0_14, %c0_15] : memref<8x128xf32, #tpu.memory_space<vmem>>, vector<8x128xf32>
    %c0_16 = arith.constant 0 : index
    %c0_17 = arith.constant 0 : index
    %26 = vector.load %arg7[%c0_16, %c0_17] : memref<1x128xf32, #tpu.memory_space<vmem>>, vector<1x128xf32>
    %27 = arith.subf %26, %21 : vector<1x128xf32>
    %28 = math.exp %27 : vector<1x128xf32>
    %29 = vector.broadcast %28 : vector<1x128xf32> to vector<8x128xf32>
    %30 = arith.mulf %25, %29 : vector<8x128xf32>
    %cst_18 = arith.constant dense<0.000000e+00> : vector<8x128xf32>
    %31 = tpu.matmul %13, %24, %cst_18 {dimension_numbers = #tpu.dot_dimension_numbers<[1], [0], [0], [1], [0, 0, 1, 1], [], []>} : vector<8x32xf32>, vector<32x128xf32>, vector<8x128xf32> -> vector<8x128xf32>
    %32 = arith.addf %30, %31 : vector<8x128xf32>
    %c0_19 = arith.constant 0 : index
    %c0_20 = arith.constant 0 : index
    %33 = vector.load %arg8[%c0_19, %c0_20] : memref<8x128xf32, #tpu.memory_space<vmem>>, vector<8x128xf32>
    tpu.vector_store %arg8[%c0_19, %c0_20], %32 {strides = array<i32>} : memref<8x128xf32, #tpu.memory_space<vmem>>, vector<8x128xf32>,
    %c0_21 = arith.constant 0 : index
    %c0_22 = arith.constant 0 : index
    %34 = vector.load %arg7[%c0_21, %c0_22] : memref<1x128xf32, #tpu.memory_space<vmem>>, vector<1x128xf32>
    tpu.vector_store %arg7[%c0_21, %c0_22], %21 {strides = array<i32>} : memref<1x128xf32, #tpu.memory_space<vmem>>, vector<1x128xf32>,
    %c1_i32 = arith.constant 1 : i32
    %35 = arith.cmpi eq, %arg1, %c1_i32 : i32
    %36 = arith.extui %35 : i1 to i32
    %c0_i32_23 = arith.constant 0 : i32
    %37 = arith.cmpi ne, %36, %c0_i32_23 : i32
    scf.if %37 {
      %c0_24 = arith.constant 0 : index
      %c0_25 = arith.constant 0 : index
      %38 = vector.load %arg6[%c0_24, %c0_25] : memref<8x128xf32, #tpu.memory_space<vmem>>, vector<8x128xf32>
      %39 = vector.extract_strided_slice %38 {offsets = [0, 0], sizes = [1, 128], strides = [1, 1]} : vector<8x128xf32> to vector<1x128xf32>
      %c0_26 = arith.constant 0 : index
      %c0_27 = arith.constant 0 : index
      %40 = vector.load %arg4[%c0_26, %c0_27] : memref<1x128xf32, #tpu.memory_space<vmem>>, vector<1x128xf32>
      tpu.vector_store %arg4[%c0_26, %c0_27], %39 {strides = array<i32>} : memref<1x128xf32, #tpu.memory_space<vmem>>, vector<1x128xf32>,
      %c0_28 = arith.constant 0 : index
      %c0_29 = arith.constant 0 : index
      %41 = vector.load %arg7[%c0_28, %c0_29] : memref<1x128xf32, #tpu.memory_space<vmem>>, vector<1x128xf32>
      %c0_30 = arith.constant 0 : index
      %c0_31 = arith.constant 0 : index
      %42 = vector.load %arg8[%c0_30, %c0_31] : memref<8x128xf32, #tpu.memory_space<vmem>>, vector<8x128xf32>
      %43 = vector.extract_strided_slice %42 {offsets = [0, 0], sizes = [1, 128], strides = [1, 1]} : vector<8x128xf32> to vector<1x128xf32>
      %44 = math.log %43 : vector<1x128xf32>
      %45 = arith.addf %41, %44 : vector<1x128xf32>
      %c0_32 = arith.constant 0 : index
      %c0_33 = arith.constant 0 : index
      %46 = vector.load %arg5[%c0_32, %c0_33] : memref<1x128xf32, #tpu.memory_space<vmem>>, vector<1x128xf32>
      tpu.vector_store %arg5[%c0_32, %c0_33], %45 {strides = array<i32>} : memref<1x128xf32, #tpu.memory_space<vmem>>, vector<1x128xf32>,
    } else {
    }
    return
  }
  func.func @transform_0(%arg0: i32, %arg1: i32) -> (i32, i32) {
    %c0_i32 = arith.constant 0 : i32
    return %arg1, %arg0 : i32, i32
  }
  func.func @transform_1(%arg0: i32, %arg1: i32) -> (i32, i32) {
    %c0_i32 = arith.constant 0 : i32
    return %arg1, %arg0 : i32, i32
  }
  func.func @transform_2(%arg0: i32, %arg1: i32) -> (i32, i32) {
    %c0_i32 = arith.constant 0 : i32
    %c0_i32_0 = arith.constant 0 : i32
    return %c0_i32, %arg0 : i32, i32
  }
  func.func @transform_3(%arg0: i32, %arg1: i32) -> (i32, i32) {
    %c0_i32 = arith.constant 0 : i32
    %c0_i32_0 = arith.constant 0 : i32
    return %c0_i32, %arg0 : i32, i32
  }
}

</mosaic_0001>

<bundles_post_ra>
// kernel: tpu_custom_call.1
= control target key start
LH: loop header
LB: loop body
LE: loop exit
PB: predicated region body
PF: predicated region fallthrough
CT: control target
= control target key end

     0   :  { %s1219_s0 = inlined_call_operand.hbm [shape: bf16[64,512], index: 0, kind: input, shape index: {}]   ;;  %s1220_s1 = inlined_call_operand.hbm [shape: s8[64,512], index: 1, kind: input, shape index: {}]   ;;  %s1221_s2 = inlined_call_operand.hbm [shape: f32[1,512], index: 2, kind: output, shape index: {0}]   ;;  %s1222_s3 = inlined_call_operand.hbm [shape: f32[1,512], index: 3, kind: output, shape index: {1}]  }
   0x1   :  { %1229 = sst [smem:[#allocation25_spill]] %s1219_s0 }
   0x2   :  { %9 = vsyncpa [#allocation6], 0 }
   0x3   :  { %11 = vsyncpa [#allocation6 + $0x1], 0 }
   0x4   :  { %12 = vsyncpa [#allocation9], 0 }
   0x5   :  { %14 = vsyncpa [#allocation9 + $0x1], 0 }
   0x6   :  { %15 = vsyncpa [#allocation7], 0 }
   0x7   :  { %17 = vsyncpa [#allocation7 + $0x1], 0 }
   0x8   :  { %18 = vsyncpa [#allocation12], 0 }
   0x9   :  { %20 = vsyncpa [#allocation12 + $0x1], 0  ;;  %s990_s12 = smov 0   ;;  %s992_s13 = smov 0  }
   0xa   :  { %s994_s14 = smov 0   ;;  %s996_s15 = smov 0  }
   0xb   :  { %s998_s16 = smov 0   ;;  %s1000_s17 = smov 0  }
   0xc   :  { %s1002_s18 = smov 0   ;;  %s1004_s19 = smov 0  }
   0xd   :  { %s1006_s20 = smov 0   ;;  %s1008_s21 = smov 0  }
   0xe   :  { %s1010_s22 = smov 0  }
   0xf LB: > { %1230 = sst [smem:[#allocation17_spill]] %s921_s12  ;;  %s578_s23 = sadd.s32 4294967295, %s961_s22   ;;  %s961_s22 = sphi %s1010_s22, %s26_s22   ;;  %s957_s21 = sphi %s1008_s21, %s1261_s21   ;;  %s953_s20 = sphi %s1006_s20, %s1260_s20   ;;  %s949_s19 = sphi %s1004_s19, %s1259_s19   ;;  %s945_s18 = sphi %s1002_s18, %s1258_s18   ;;  %s941_s17 = sphi %s1000_s17, %s1251_s17   ;;  %s937_s16 = sphi %s998_s16, %s1257_s16   ;;  %s933_s15 = sphi %s996_s15, %s1256_s15   ;;  %s929_s14 = sphi %s994_s14, %s1249_s14   ;;  %s925_s13 = sphi %s992_s13, %s1255_s13   ;;  %s921_s12 = sphi %s990_s12, %s1254_s12  }
  0x10   : > { %1231 = sst [smem:[#allocation18_spill]] %s929_s14  ;;  %s579_s24 = sadd.s32 4294967294, %s961_s22  }
  0x11   : > { %1232 = sst [smem:[#allocation19_spill]] %s941_s17  ;;  %s35_s25 = sadd.s32 1, %s953_s20 }
  0x12   : > { %s38_s26 = sadd.s32 1, %s957_s21  ;;  %p36_p0 = scmp.ge.s32.totalorder %s35_s25, 2 }
  0x13   : > { %s47_s27 = sadd.s32 1, %s941_s17  ;;  %p54_p1 = scmp.ne.s32.totalorder %s941_s17, %s937_s16 }
  0x14   : > { %p55_p2 = scmp.eq.s32.totalorder %s961_s22, 0  ;;  %s1263_s25 = smov (%p36_p0, %s35_s25), 0 }
  0x15   : > { %1233 = sst [smem:[#allocation20_spill]] %s1263_s25  ;;  %s1265_s26 = smov (!%p36_p0, %s38_s26), %s957_s21 }
  0x16   : > { %s42_s28 = ssub.s32 %s953_s20, %s1263_s25  ;;  %p1056_p3 = por %p55_p2, %p54_p1 }
  0x17   : > { %p40_p4 = scmp.ge.s32.totalorder %s1265_s26, 4  ;;  %p60_p5 = scmp.ne.s32.totalorder %s937_s16, %s933_s15 }
  0x18   : > { %p61_p6 = scmp.eq.s32.totalorder %s578_s23, 0  ;;  %s101_s30 = sadd.s32 1, %s929_s14 }
  0x19   : > { %s1267_s26 = smov (%p40_p4, %s1265_s26), 0  ;;  %p111_p8 = scmp.ne.s32.totalorder %s929_s14, %s925_s13 }
  0x1a   : > { %1235 = sst [smem:[#allocation21_spill]] %s1267_s26  ;;  %p1064_p7 = por %p61_p6, %p60_p5 }
  0x1b   : > { %s43_s5 = ssub.s32 %s957_s21, %s1267_s26  ;;  %p112_p9 = scmp.eq.s32.totalorder %s578_s23, 7 }
  0x1c   : > { %s44_s6 = sor.u32 %s43_s5, %s42_s28  ;;  %p99_p10 = scmp.eq.s32.totalorder %s43_s5, 0 }
  0x1d   : > { %p45_p11 = scmp.eq.s32.totalorder %s44_s6, 0  ;;  %p1072_p12 = por %p112_p9, %p111_p8 }
  0x1e   : > { %s1077_s8 = scalar_select %p99_p10, %s929_s14, %s101_s30  }
  0x1f   : > { %s1080_s9 = scalar_select %p45_p11, %s941_s17, %s47_s27  }
  0x20   : > { %1238 = sst [smem:[#allocation22_spill]] %s1077_s8  ;;  %p117_p13 = scmp.ne.s32.totalorder %s925_s13, %s921_s12 }
  0x21   : > { %1239 = sst [smem:[#allocation23_spill]] %s1080_s9  ;;  %p118_p0 = scmp.eq.s32.totalorder %s579_s24, 7 }
  0x22   : > { %p634_p1 = scmp.lt.s32.totalorder %s961_s22, 8  ;;  %s1090_s11 = sand.u32 1, %s941_s17  }
  0x23   : > { %p1085_p2 = por %p118_p0, %p117_p13  ;;  %s582_s15 = sshll.u32 %s1090_s11, 4 }
  0x24   : > { %s602_s23 = sshll.u32 %s953_s20, 4  ;;  %s168_s30 = scalar_lea.vmem [#allocation5], %s582_s15 }
  0x25   : > { %s1240_s10 = scalar_select %p1085_p2, 1, 0 }
  0x26   : > { %s173_s28 = sadd.s32 %s957_s21, %s602_s23  ;;  %s178_s27 = sshll.u32 %s168_s30, 4  ;;  %s179_s27 = int_to_ptr.vmem [resolvable:$true] %s178_s27 }
  0x27   : > { %1241 = sst [smem:[#allocation24_spill]] %s1240_s10  ;;  %s585_s5 = sshll.u32 %s173_s28, 2 }
  0x28   : > { %s1242_s0 = sld [smem:[#allocation25_spill]]  ;;  %p1100_p4 = pnand %p634_p1, %p1056_p3 }
  0x29   : > { %s165_s23 = scalar_lea.sflag [#allocation6], %s1090_s11  ;;  %s963_s17 = smov 256  }
  0x2a   : > { %s964_s15 = smov 64   ;;  %s965_s30 = smov 4  }
  0x2b   : > { %p589_p5 = scmp.ge.s32.totalorder %s961_s22, 1  ;;  %p207_p6 = scmp.lt.s32.totalorder %s961_s22, 9 }
  0x2c   : > { %s586_s28 = sshll.u32 %s1090_s11, 3  ;;  %s587_s29 = sshll.u32 %s953_s20, 2 }
  0x2d   : > { %p208_p8 = pnand %p589_p5, %p207_p6  ;;  %s196_s6 = sadd.s32 %s957_s21, %s587_s29 }
  0x2e   : > { %s175_s26 = scalar_lea.hbm %s1242_s0, %s585_s5  ;;  %s192_s5 = scalar_lea.vmem [#allocation8], %s586_s28 }
  0x2f   : > { %s176_s9 = sshll.u32 %s175_s26, 4  ;;  %s202_s24 = sshll.u32 %s192_s5, 4  ;;  %s177_s9 = int_to_ptr.hbm [resolvable:$true] %s176_s9  ;;  %s203_s24 = int_to_ptr.vmem [resolvable:$true] %s202_s24 }
  0x30   : > { %623 = dma.hbm_to_vmem [thread:$0]  (!%p1100_p4), %s177_s9, 256, %s179_s27, %s165_s23, %s963_s17, %s964_s15, %s965_s30  }
  0x31   : > { %s588_s0 = sshll.u32 %s196_s6, 3  ;;  %s189_s12 = scalar_lea.sflag [#allocation9], %s1090_s11 }
  0x32   : > { %s198_s14 = scalar_lea.hbm %s1220_s1, %s588_s0  ;;  %211 = sbr.rel (%p208_p8) target bundleno = 302 (0x12e), region = 28 }
  0x33   : > { %s200_s10 = sshll.u32 %s198_s14, 4  ;;  %s213_s17 = sand.u32 (!%p208_p8), 1, %s937_s16   ;;  %s201_s10 = int_to_ptr.hbm [resolvable:$true] %s200_s10 }
  0x34   : > { %626 = dma.hbm_to_vmem [thread:$0]  (!%p1100_p4), %s201_s10, 128, %s203_s24, %s189_s12  }
  0x35   : > { %s590_s9 = sshll.u32 (!%p208_p8), %s213_s17, 4  ;;  %s214_s27 = scalar_lea.sflag (!%p208_p8), [#allocation6], %s213_s17 }
  0x36   : > { %s217_s23 = scalar_lea.vmem (!%p208_p8), [#allocation5], %s590_s9 }
  0x37   : > { %904 = dma.done.wait (%p1064_p7), %s214_s27, 256  }
  0x38   : > { %906 = vsyncadd (%p1064_p7), %s214_s27, 4294967040  ;;  %s591_s0 = sshll.u32 %s213_s17, 3  ;;  %s224_s8 = scalar_lea.sflag [#allocation9], %s213_s17 }
  0x39   : > { %s227_s14 = scalar_lea.vmem [#allocation8], %s591_s0 }
  0x3a   : > { %908 = dma.done.wait (%p1064_p7), %s224_s8, 128  }
  0x3b   : > { %910 = vsyncadd (%p1064_p7), %s224_s8, 4294967168  ;;  %s1128_s12 = sand.u32 1, %s925_s13   ;;  %p592_p3 = scmp.ne.s32.totalorder %s945_s18, 0 }
  0x3c   : > { %s252_s25 = scalar_lea.vmem [#allocation10], %s1128_s12  ;;  %s258_s10 = scalar_lea.vmem [#allocation11], %s1128_s12 }
  0x3d   : > { %265 = sbr.rel (%p592_p3) target bundleno = 70 (0x46), region = 40 }
  0x42   : > { %v966_v0 = vmov 0.0   ;;  %v967_v1 = vmov -inf  }
  0x43   : > { %266 = vst [vmem:[#allocation2] sm:$0xff] %v966_v0 }
  0x44   : > { %268 = vst [vmem:[#allocation4] sm:$0xff] %v966_v0 }
  0x45   : > { %267 = vst [vmem:[#allocation3] sm:$0x1] %v967_v1 }
  0x46 PF: > { %v281_v2 = vld [vmem:[%s227_s14] sm:$0xff]  ;;  %v611_v4 = vld [vmem:[%s217_s23 + $0x8] sm:$0xff]   ;;  %v968_v5 = vmov 0   ;;  %vm321_vm9 = vcmask 261120   ;;  %v969_v49 = vmov 1.0   ;;  %p599_p7 = scmp.ne.s32.totalorder %s945_s18, 1 }
  0x47   : > { %vm282_vm0 = vnez %v281_v2  ;;  %v604_v3 = vld [vmem:[%s217_s23] sm:$0xff]   ;;  %v609_v13 = vunpack.c.l.bf16 %v611_v4  ;;  %v610_v14 = vunpack.c.h.bf16 %v611_v4 }
  0x48   : > { %v283_v6 = vsel %vm282_vm0, 16843009, %v968_v5  ;;  %v605_v11 = vunpack.c.l.bf16 %v604_v3  ;;  %v606_v12 = vunpack.c.h.bf16 %v604_v3 }
  0x49   : > { %v284_v7 = vunpack.c.0.s8 %v283_v6  ;;  %v285_v8 = vunpack.c.1.s8 %v283_v6  ;;  %v286_v9 = vunpack.c.2.s8 %v283_v6  ;;  %v287_v10 = vunpack.c.3.s8 %v283_v6 }
  0x4a   : > { %v277_v23 = vmul.f32 5.0, %v605_v11  ;;  %v278_v24 = vmul.f32 5.0, %v606_v12  ;;  %v279_v25 = vmul.f32 5.0, %v609_v13  ;;  %v280_v26 = vmul.f32 5.0, %v610_v14 }
  0x4b   : > { %v288_v15 = vpack.c.b16 %v284_v7, %v284_v7  ;;  %v290_v16 = vpack.c.b16 %v285_v8, %v285_v8  ;;  %v292_v17 = vpack.c.b16 %v286_v9, %v286_v9  ;;  %v294_v18 = vpack.c.b16 %v287_v10, %v287_v10  ;;  %v373_v12 = vld [vmem:[#allocation4] sm:$0xff] }
  0x4c   : > { %v347_v53 = vld [vmem:[#allocation3] sm:$0x1] }
  0x4d   : > { %v289_v19 = vpack.c.b8 %v288_v15, %v288_v15  ;;  %v291_v20 = vpack.c.b8 %v290_v16, %v290_v16  ;;  %v293_v21 = vpack.c.b8 %v292_v17, %v292_v17  ;;  %v295_v22 = vpack.c.b8 %v294_v18, %v294_v18 }
  0x4f   : > { %vm296_vm1 = vnez %v289_v19  ;;  %vm297_vm2 = vnez %v291_v20  ;;  %vm298_vm3 = vnez %v293_v21  ;;  %vm299_vm4 = vnez %v295_v22 }
  0x50   : > { %v300_v27 = vsel %vm296_vm1, 16843009, %v968_v5  ;;  %v301_v28 = vsel %vm297_vm2, 16843009, %v968_v5  ;;  %v302_v29 = vsel %vm298_vm3, 16843009, %v968_v5 }
  0x51   : > { %v303_v30 = vsel %vm299_vm4, 16843009, %v968_v5  ;;  %v304_v31 = vunpack.c.0.s8 %v300_v27  ;;  %v305_v32 = vunpack.c.0.s8 %v301_v28  ;;  %v306_v33 = vunpack.c.0.s8 %v302_v29  ;;  %v320_v5 = vld [vmem:[#allocation2] sm:$0xff] }
  0x52   : > { %v307_v34 = vunpack.c.0.s8 %v303_v30 }
  0x53   : > { %vm1133_vm5 = vcmp.ne.s32.totalorder %v304_v31, 0  ;;  %vm309_vm6 = vcmp.ne.s32.totalorder %v305_v32, 0  ;;  %vm310_vm7 = vcmp.ne.s32.totalorder %v306_v33, 0 }
  0x54   : > { %vm311_vm8 = vcmp.ne.s32.totalorder %v307_v34, 0  ;;  %v312_v36 = vsel %vm1133_vm5, %v277_v23, 0.0  ;;  %v313_v37 = vsel %vm309_vm6, %v278_v24, 0.0  ;;  %v314_v38 = vsel %vm310_vm7, %v279_v25, 0.0 }
  0x55   : > { %v315_v39 = vsel %vm311_vm8, %v280_v26, 0.0  ;;  %v316_v40 = vsub.f32 %v277_v23, %v312_v36  ;;  %v317_v41 = vsub.f32 %v278_v24, %v313_v37  ;;  %v318_v42 = vsub.f32 %v279_v25, %v314_v38  ;;  %593 = vmatpush.msk.msra.mxu0 %vm311_vm8, %v280_v26 }
  0x56   : > { %v319_v43 = vsub.f32 %v280_v26, %v315_v39 }
  0x57   : > { %v348_v44 = vmax.f32 %v316_v40, %v317_v41  ;;  %594 = vmatpush.msk.msra.mxu0 %vm310_vm7, %v279_v25 }
  0x58   : > { %v349_v45 = vmax.f32 %v318_v42, %v319_v43 }
  0x59   : > { %595 = vmatpush.msk.msra.mxu0 %vm309_vm6, %v278_v24 }
  0x5a   : > { %v350_v46 = vmax.f32 %v348_v44, %v349_v45 }
  0x5b   : > { %596 = vmatpush.msk.msra.mxu0 %vm1133_vm5, %v277_v23 }
  0x5c   : > { %v351_v47 = vrot.slane %v350_v46, 4  ;;  %597 = vmatmul.msk.f32.vlgmr.msra.gmra.mxu0 %vm321_vm9, %v969_v49 }
  0x5e   : > { %v352_v48 = vmax.f32 %v350_v46, %v351_v47 }
  0x60   : > { %v353_v50 = vrot.slane %v352_v48, 2 }
  0x62   : > { %v354_v51 = vmax.f32 %v352_v48, %v353_v50 }
  0x64   : > { %v355_v52 = vrot.slane %v354_v51, 1 }
  0x66   : > { %v356_v54 = vmax.f32 %v354_v51, %v355_v52 }
  0x68   : > { %v357_v55 = vmax.f32 %v347_v53, %v356_v54 }
  0x6a   : > { %403 = vst [vmem:[#allocation3] sm:$0x1] %v357_v55  ;;  %v359_v56 = vperm.slane %v357_v55, 0  ;;  %v374_v8 = vsub.f32 %v347_v53, %v357_v55 }
  0x6c   : > { %v364_v57 = vsub.f32 %v319_v43, %v359_v56  ;;  %v363_v58 = vsub.f32 %v318_v42, %v359_v56  ;;  %v362_v59 = vsub.f32 %v317_v41, %v359_v56  ;;  %v361_v60 = vsub.f32 %v316_v40, %v359_v56 }
  0x6d   : > { %v375_v9 = vmul.f32 1.442695, %v374_v8 }
  0x6e   : > { %v371_v61 = vmul.f32 1.442695, %v364_v57  ;;  %v369_v62 = vmul.f32 1.442695, %v363_v58  ;;  %v367_v63 = vmul.f32 1.442695, %v362_v59 }
  0x6f   : > { %v365_v0 = vmul.f32 1.442695, %v361_v60 }
  0x70   : > { %731 = vpow2.f32 %v371_v61 }
  0x71   : > { %733 = vpow2.f32 %v369_v62 }
  0x72   : > { %735 = vpow2.f32 %v367_v63 }
  0x73   : > { %737 = vpow2.f32 %v365_v0 }
  0x74   : > { %739 = vpow2.f32 %v375_v9 }
  0x76   : > { %v732_v1 = vpop.eup %731 }
  0x77   : > { %v734_v2 = vpop.eup %733  ;;  %393 = vmatpush.msra.mxu1 %v732_v1 }
  0x78   : > { %v736_v3 = vpop.eup %735 }
  0x79   : > { %394 = vmatpush.msra.mxu1 %v734_v2  ;;  %v738_v4 = vpop.eup %737 }
  0x7a   : > { %v740_v10 = vpop.eup %739 }
  0x7b   : > { %395 = vmatpush.msra.mxu1 %v736_v3  ;;  %v378_v11 = vperm.slane %v740_v10, 0 }
  0x7d   : > { %396 = vmatpush.msra.mxu1 %v738_v4  ;;  %v380_v13 = vmul.f32 %v378_v11, %v373_v12 }
  0x7e   : > { %598 = vmatmul.msk.f32.vlgmr.msra.gmra.mxu1 %vm321_vm9, %v969_v49 }
  0xd9   : > { %v342_v6 = vpop.f32.mrf.mxu0 }
  0xda   : > { %v345_v7 = vadd.f32 %v342_v6, %v320_v5 }
  0xdc   : > { %346 = vst [vmem:[#allocation2] sm:$0xff] %v345_v7 }
  0xfa   : > { %407 = sbr.rel (%p599_p7) target bundleno = 274 (0x112), region = 44 }
  0xfb   : > { %v398_v14 = vpop.f32.mrf.mxu1 }
  0xfc   : > { %v401_v15 = vadd.f32 %v398_v14, %v380_v13 }
  0xfe   : > { %402 = vst [vmem:[#allocation4] sm:$0xff] %v401_v15 }
  0xff   : > { %v408_v16 = vld [vmem:[#allocation2] sm:$0xff]  ;;  %v410_v19 = vld [vmem:[#allocation3] sm:$0x1] }
 0x100   : > { %409 = vst [vmem:[%s252_s25] sm:$0x1] %v408_v16 }
 0x105   : > { %v411_v17 = vld [vmem:[#allocation4] sm:$0xff] }
 0x106   : > { %741 = vlog2.f32 %v411_v17 }
 0x10c   : > { %v742_v18 = vpop.eup %741 }
 0x10d   : > { %v413_v20 = vmul.f32 0.6931472, %v742_v18 }
 0x10f   : > { %v414_v21 = vadd.f32 %v413_v20, %v410_v19 }
 0x111   : > { %415 = vst [vmem:[%s258_s10] sm:$0x1] %v414_v21 }
 0x112 PF: > { %s429_s18 = scalar_lea.hbm %s1221_s2, %s949_s19  ;;  %s431_s15 = sshll.u32 %s252_s25, 4  ;;  %s432_s15 = int_to_ptr.vmem [resolvable:$true] %s431_s15 }
 0x113   : > { %s433_s30 = sshll.u32 %s429_s18, 4  ;;  %s417_s28 = scalar_lea.sflag [#allocation7], %s1128_s12  ;;  %s434_s30 = int_to_ptr.hbm [resolvable:$true] %s433_s30 }
 0x114   : > { %s817_s29 = sshra.s32 %s434_s30, 4  ;;  %s823_s26 = scalar_lea.hbm %s1221_s2, 4  ;;  %s818_s29 = int_to_ptr.hbm [resolvable:$true] %s817_s29 }
 0x115   : > { %s819_s5 = scalar_lea.hbm %s818_s29, 1  ;;  %p824_p13 = scmp.lt.s32.totalorder %s818_s29, %s1221_s2 }
 0x116   : > { %p820_p9 = scmp.ne.s32.totalorder %s818_s29, %s819_s5  ;;  %p825_p0 = scmp.lt.s32.totalorder %s823_s26, %s819_s5 }
 0x118   : > { %p821_p10 = pnand %p820_p9, %p1072_p12  ;;  %p826_p1 = por %p825_p0, %p824_p13 }
 0x11a   : > { %p822_p11 = pneg %p821_p10 }
 0x11c   : > { %p827_p4 = pnand %p826_p1, %p822_p11 }
 0x11e   : > { %830 = shalt.err (!%p827_p4)
}
 0x11f   : > { %616 = dma.vmem_to_hbm [thread:$0]  (%p1072_p12), %s432_s15, 16, %s434_s30, %s417_s28  }
 0x120   : > { %s442_s0 = scalar_lea.hbm %s1222_s3, %s949_s19  ;;  %s444_s8 = sshll.u32 %s258_s10, 4  ;;  %s445_s8 = int_to_ptr.vmem [resolvable:$true] %s444_s8 }
 0x121   : > { %s446_s14 = sshll.u32 %s442_s0, 4  ;;  %s421_s25 = scalar_lea.sflag [#allocation12], %s1128_s12  ;;  %s447_s14 = int_to_ptr.hbm [resolvable:$true] %s446_s14 }
 0x122   : > { %s845_s4 = sshra.s32 %s447_s14, 4  ;;  %s851_s15 = scalar_lea.hbm %s1222_s3, 4  ;;  %s846_s4 = int_to_ptr.hbm [resolvable:$true] %s845_s4 }
 0x123   : > { %s847_s11 = scalar_lea.hbm %s846_s4, 1  ;;  %p852_p3 = scmp.lt.s32.totalorder %s846_s4, %s1222_s3 }
 0x124   : > { %p848_p5 = scmp.ne.s32.totalorder %s846_s4, %s847_s11  ;;  %p853_p7 = scmp.lt.s32.totalorder %s851_s15, %s847_s11 }
 0x126   : > { %p849_p6 = pnand %p848_p5, %p1072_p12  ;;  %p854_p9 = por %p853_p7, %p852_p3 }
 0x128   : > { %p850_p8 = pneg %p849_p6 }
 0x12a   : > { %p855_p10 = pnand %p854_p9, %p850_p8 }
 0x12c   : > { %858 = shalt.err (!%p855_p10)
}
 0x12d   : > { %617 = dma.vmem_to_hbm [thread:$0]  (%p1072_p12), %s445_s8, 16, %s447_s14, %s421_s25  }
 0x12e PF: > { %s1246_s19 = sld [smem:[#allocation17_spill]]  ;;  %p635_p11 = scmp.ge.s32.totalorder %s961_s22, 2 }
 0x130   : > { %p628_p13 = pnand %p635_p11, %p1085_p2 }
 0x132   : > { %p629_p0 = pneg %p628_p13 }
 0x134   : > { %s458_s10 = sand.u32 1, %s1246_s19  }
 0x135   : > { %s459_s5 = scalar_lea.sflag [#allocation7], %s458_s10 }
 0x136   : > { %912 = dma.done.wait (%p629_p0), %s459_s5, 16  }
 0x137   : > { %914 = vsyncadd (%p629_p0), %s459_s5, 4294967280  ;;  %s468_s24 = scalar_lea.sflag [#allocation12], %s458_s10 }
 0x138   : > { %916 = dma.done.wait (%p629_p0), %s468_s24, 16  }
 0x139   : > { %918 = vsyncadd (%p629_p0), %s468_s24, 4294967280  ;;  %s26_s22 = sadd.s32 1, %s961_s22   ;;  %s1248_s7 = sld [smem:[#allocation18_spill]] }
 0x13a   : > { %p23_p1 = scmp.ge.s32.totalorder %s26_s22, 10   ;;  %s1249_s14 = sld [smem:[#allocation22_spill]] }
 0x13b   : > { %s1250_s6 = sld [smem:[#allocation19_spill]]  ;;  %s1254_s12 = smov %s925_s13 }
 0x13c   : > { %s1251_s17 = sld [smem:[#allocation23_spill]]  ;;  %s1256_s15 = smov %s937_s16 }
 0x13d   : > { %s1252_s26 = sld [smem:[#allocation20_spill]]  ;;  %s1258_s18 = smov %s953_s20 }
 0x13e   : > { %s1253_s9 = sld [smem:[#allocation21_spill]]  ;;  %s1259_s19 = smov %s957_s21 }
 0x13f   : > { %s1255_s13 = smov %s1248_s7 }
 0x140   :  { %25 = sbr.rel (!%p23_p1) target bundleno = 15 (0xf), region = 111 }
 0x141   : > { %s1257_s16 = smov %s1250_s6 }
 0x143   : > { %s1260_s20 = smov %s1252_s26 }
 0x144   : > { %s1261_s21 = smov %s1253_s9 }
 0x145   :  { %473 = vsyncpa [#allocation6], 1 }
 0x146   :  { %475 = vsyncpa [#allocation6 + $0x1], 1 }
 0x147   :  { %476 = vsyncpa [#allocation9], 1 }
 0x148   :  { %478 = vsyncpa [#allocation9 + $0x1], 1 }
 0x149   :  { %479 = vsyncpa [#allocation7], 1 }
 0x14a   :  { %481 = vsyncpa [#allocation7 + $0x1], 1 }
 0x14b   :  { %482 = vsyncpa [#allocation12], 1 }
 0x14c   :  { %484 = vsyncpa [#allocation12 + $0x1], 1 }

</bundles_post_ra>
